<compile_context>
chip_gen: v7x
topology: tpu7x:2x2x1
jax: 0.10.0
libtpu: 0.0.40
codegen_flags: <defaults>
</compile_context>

<pallas_src>
import functools

import jax
import jax.numpy as jnp
import numpy as np
from jax.experimental import pallas as pl
from jax.experimental.pallas import tpu as pltpu


def _fpt_kernel(w_ref, b_ref, x_ref, u_ref, o_ref, *, alpha: float):
    """One (batch, feature-tile): three fused addmm + surrogate-sigmoid passes,
    then Bernoulli sampling against the supplied uniforms."""
    W = w_ref[...]                          # (T, T) bf16, already lower-triangular
    b = b_ref[...]                          # (T, 1) f32, broadcasts over lanes
    X = x_ref[...].astype(jnp.float32)      # (T, TILE_F) f32

    def tril_mm(rhs_f32):
        # MXU matmul in bf16, f32 accumulation.
        return jnp.dot(W, rhs_f32.astype(jnp.bfloat16),
                       preferred_element_type=jnp.float32)

    # h = addmm(bias, tril(W), X); spike = sigmoid(alpha * h)
    h = b + tril_mm(X)
    s = jax.nn.sigmoid(alpha * h)

    # h = addmm(bias, tril(W), X - spike) + spike; spike = sigmoid(3*alpha*h)
    h = b + tril_mm(X - s) + s
    s = jax.nn.sigmoid(3.0 * alpha * h)

    # h = addmm(bias, tril(W), X - spike) + spike; spike = sigmoid(12*alpha*h)
    h = b + tril_mm(X - s) + s
    s = jax.nn.sigmoid(12.0 * alpha * h)

    # SurrogateSampling: Bernoulli(p = s) via per-tile uniform randoms.
    o_ref[...] = (u_ref[...] < s).astype(o_ref.dtype)


def _choose_tile_f(F: int, T: int) -> int:
    """Largest lane-dense tile that divides F and keeps ~2x double-buffered
    copies of the three f32 (T, TILE_F) streams (+ bf16 W) well inside the
    scoped-VMEM default on every TPU generation."""
    if F % 128 != 0:
        return F                      # small / odd feature count: full extent
    budget = 24 * 1024 * 1024
    for t in (2048, 1024, 512, 256, 128):
        if F % t == 0 and 6 * T * t * 4 + 2 * T * T <= budget:
            return t
    return 128


def fpt_adaptive_alpha_forward(x, weight, bias, key, *, alpha: float = 1.0,
                               tile_f=None):
    """x: (B, T, *feature_dims) float32.  Returns Bernoulli spikes, same shape."""
    B, T = x.shape[0], x.shape[1]
    feat = x.shape[2:]
    F = int(np.prod(feat)) if len(feat) > 0 else 1

    # Pure reshape (no transpose): the (B, T, F) per-batch slabs ARE contiguous
    # column blocks of the (T, B*F) operand used by the PyTorch addmm calls.
    x_btf = x.reshape(B, T, F).astype(jnp.float32)
    u_btf = jax.random.uniform(key, (B, T, F), dtype=jnp.float32)
    # TODO(synk): on hardware the uniforms could instead come from
    # pltpu.prng_random_bits inside the kernel (seeded per grid step with
    # pl.program_id) to save one HBM input stream; the interpret/CPU sandbox
    # has no lowering for prng_seed, so they are passed in explicitly.

    w_tril = jnp.tril(weight).astype(jnp.bfloat16)    # (T, T) MXU operand
    b_col = bias.reshape(T, 1).astype(jnp.float32)     # (T, 1)

    TILE_F = _choose_tile_f(F, T) if tile_f is None else tile_f
    assert F % TILE_F == 0, (F, TILE_F)
    grid = (B, F // TILE_F)

    tile_spec = pl.BlockSpec((None, T, TILE_F), lambda bi, fi: (bi, 0, fi))

    spikes = pl.pallas_call(
        functools.partial(_fpt_kernel, alpha=float(alpha)),
        out_shape=jax.ShapeDtypeStruct((B, T, F), jnp.float32),
        grid=grid,
        in_specs=[
            pl.BlockSpec((T, T), lambda bi, fi: (0, 0)),   # tril(W): resident
            pl.BlockSpec((T, 1), lambda bi, fi: (0, 0)),   # bias col: resident
            tile_spec,                                     # x tile
            tile_spec,                                     # uniforms tile
        ],
        out_specs=tile_spec,
        compiler_params=pltpu.CompilerParams(
            dimension_semantics=("parallel", "parallel")),
    )(w_tril, b_col, x_btf, u_btf)

    # Free reshape back to (B, T, *feature_dims) — no transpose needed.
    return spikes.reshape((B, T) + feat)


def make_fpt_params(T: int, lam: float = 0.5):
    """Deterministic parameter init matching FPT_adaptive_alpha.__init__."""
    i = jnp.arange(T)[:, None]
    j = jnp.arange(T)[None, :]
    Lambda = jnp.where(j <= i, lam ** (i - j).astype(jnp.float32), 0.0)  # (T, T)
    bias = jnp.full((T,), -1.0, dtype=jnp.float32)                       # constant -1
    return Lambda.astype(jnp.float32), bias


if __name__ == "__main__":
    # Small shapes consistent with the module: (batch, T, *feature_dims)
    B, T = 2, 8
    feat = (4, 16)            # F = 64 per batch element

    key = jax.random.PRNGKey(0)
    kx, ksample = jax.random.split(key)
    x = jax.random.uniform(kx, (B, T) + feat, dtype=jnp.float32)

    weight, bias = make_fpt_params(T, lam=0.5)

    out = fpt_adaptive_alpha_forward(x, weight, bias, ksample, alpha=1.0)
    out = jax.block_until_ready(out)

    assert out.shape == x.shape, (out.shape, x.shape)
    assert out.dtype == jnp.float32
    # Bernoulli output must be binary.
    assert bool(jnp.all((out == 0.0) | (out == 1.0)))
    print("KERNEL_OK")
</pallas_src>

<mosaic_0001>
module attributes {stable_mosaic.version = 11 : i64} {
  func.func @_fpt_kernel(%arg0: i32, %arg1: i32, %arg2: memref<8x8xbf16, #tpu.memory_space<vmem>>, %arg3: memref<8x1xf32, #tpu.memory_space<vmem>>, %arg4: memref<1x8x64xf32, #tpu.memory_space<vmem>>, %arg5: memref<1x8x64xf32, #tpu.memory_space<vmem>>, %arg6: memref<1x8x64xf32, #tpu.memory_space<vmem>>) attributes {dimension_semantics = [#tpu.dimension_semantics<parallel>, #tpu.dimension_semantics<parallel>], iteration_bounds = array<i64: 2, 1>, scalar_prefetch = 0 : i64, scratch_operands = 0 : i64, tpu.core_type = #tpu.core_type<tc>, window_params = [{pipeline_mode = #tpu.pipeline_mode<synchronous>, transform_indices = @transform_0, window_bounds = array<i64: 8, 8>}, {pipeline_mode = #tpu.pipeline_mode<synchronous>, transform_indices = @transform_1, window_bounds = array<i64: 8, 1>}, {transform_indices = @transform_2, window_bounds = array<i64: 1, 8, 64>}, {transform_indices = @transform_3, window_bounds = array<i64: 1, 8, 64>}, {transform_indices = @transform_4, window_bounds = array<i64: 1, 8, 64>}]} {
    %c0 = arith.constant 0 : index
    %c0_0 = arith.constant 0 : index
    %0 = vector.load %arg2[%c0, %c0_0] : memref<8x8xbf16, #tpu.memory_space<vmem>>, vector<8x8xbf16>
    %c0_1 = arith.constant 0 : index
    %c0_2 = arith.constant 0 : index
    %1 = vector.load %arg3[%c0_1, %c0_2] : memref<8x1xf32, #tpu.memory_space<vmem>>, vector<8x1xf32>
    %c0_3 = arith.constant 0 : index
    %c0_4 = arith.constant 0 : index
    %c0_5 = arith.constant 0 : index
    %2 = vector.load %arg4[%c0_3, %c0_4, %c0_5] : memref<1x8x64xf32, #tpu.memory_space<vmem>>, vector<1x8x64xf32>
    %3 = vector.shape_cast %2 : vector<1x8x64xf32> to vector<8x64xf32>
    %4 = arith.truncf %3 : vector<8x64xf32> to vector<8x64xbf16>
    %cst = arith.constant dense<0.000000e+00> : vector<8x64xf32>
    %5 = tpu.matmul %0, %4, %cst {dimension_numbers = #tpu.dot_dimension_numbers<[1], [0], [0], [1], [0, 0, 1, 1], [], []>} : vector<8x8xbf16>, vector<8x64xbf16>, vector<8x64xf32> -> vector<8x64xf32>
    %6 = vector.broadcast %1 : vector<8x1xf32> to vector<8x64xf32>
    %7 = arith.addf %6, %5 : vector<8x64xf32>
    %cst_6 = arith.constant 1.000000e+00 : f32
    %8 = vector.broadcast %cst_6 : f32 to vector<8x64xf32>
    %9 = arith.mulf %8, %7 : vector<8x64xf32>
    %10 = arith.negf %9 : vector<8x64xf32>
    %11 = math.exp %10 : vector<8x64xf32>
    %cst_7 = arith.constant 1.000000e+00 : f32
    %12 = vector.broadcast %cst_7 : f32 to vector<8x64xf32>
    %13 = arith.addf %12, %11 : vector<8x64xf32>
    %14 = arith.divf %12, %13 : vector<8x64xf32>
    %15 = arith.subf %3, %14 : vector<8x64xf32>
    %16 = arith.truncf %15 : vector<8x64xf32> to vector<8x64xbf16>
    %cst_8 = arith.constant dense<0.000000e+00> : vector<8x64xf32>
    %17 = tpu.matmul %0, %16, %cst_8 {dimension_numbers = #tpu.dot_dimension_numbers<[1], [0], [0], [1], [0, 0, 1, 1], [], []>} : vector<8x8xbf16>, vector<8x64xbf16>, vector<8x64xf32> -> vector<8x64xf32>
    %18 = vector.broadcast %1 : vector<8x1xf32> to vector<8x64xf32>
    %19 = arith.addf %18, %17 : vector<8x64xf32>
    %20 = arith.addf %19, %14 : vector<8x64xf32>
    %cst_9 = arith.constant 3.000000e+00 : f32
    %21 = vector.broadcast %cst_9 : f32 to vector<8x64xf32>
    %22 = arith.mulf %21, %20 : vector<8x64xf32>
    %23 = arith.negf %22 : vector<8x64xf32>
    %24 = math.exp %23 : vector<8x64xf32>
    %cst_10 = arith.constant 1.000000e+00 : f32
    %25 = vector.broadcast %cst_10 : f32 to vector<8x64xf32>
    %26 = arith.addf %25, %24 : vector<8x64xf32>
    %27 = arith.divf %25, %26 : vector<8x64xf32>
    %28 = arith.subf %3, %27 : vector<8x64xf32>
    %29 = arith.truncf %28 : vector<8x64xf32> to vector<8x64xbf16>
    %cst_11 = arith.constant dense<0.000000e+00> : vector<8x64xf32>
    %30 = tpu.matmul %0, %29, %cst_11 {dimension_numbers = #tpu.dot_dimension_numbers<[1], [0], [0], [1], [0, 0, 1, 1], [], []>} : vector<8x8xbf16>, vector<8x64xbf16>, vector<8x64xf32> -> vector<8x64xf32>
    %31 = vector.broadcast %1 : vector<8x1xf32> to vector<8x64xf32>
    %32 = arith.addf %31, %30 : vector<8x64xf32>
    %33 = arith.addf %32, %27 : vector<8x64xf32>
    %cst_12 = arith.constant 1.200000e+01 : f32
    %34 = vector.broadcast %cst_12 : f32 to vector<8x64xf32>
    %35 = arith.mulf %34, %33 : vector<8x64xf32>
    %36 = arith.negf %35 : vector<8x64xf32>
    %37 = math.exp %36 : vector<8x64xf32>
    %cst_13 = arith.constant 1.000000e+00 : f32
    %38 = vector.broadcast %cst_13 : f32 to vector<8x64xf32>
    %39 = arith.addf %38, %37 : vector<8x64xf32>
    %40 = arith.divf %38, %39 : vector<8x64xf32>
    %c0_14 = arith.constant 0 : index
    %c0_15 = arith.constant 0 : index
    %c0_16 = arith.constant 0 : index
    %41 = vector.load %arg5[%c0_14, %c0_15, %c0_16] : memref<1x8x64xf32, #tpu.memory_space<vmem>>, vector<1x8x64xf32>
    %42 = vector.shape_cast %41 : vector<1x8x64xf32> to vector<8x64xf32>
    %43 = arith.cmpf olt, %42, %40 : vector<8x64xf32>
    %44 = arith.extui %43 : vector<8x64xi1> to vector<8x64xi32>
    %45 = arith.sitofp %44 : vector<8x64xi32> to vector<8x64xf32>
    %c0_17 = arith.constant 0 : index
    %c0_18 = arith.constant 0 : index
    %c0_19 = arith.constant 0 : index
    %46 = vector.load %arg6[%c0_17, %c0_18, %c0_19] : memref<1x8x64xf32, #tpu.memory_space<vmem>>, vector<1x8x64xf32>
    %47 = vector.shape_cast %46 : vector<1x8x64xf32> to vector<8x64xf32>
    %48 = vector.shape_cast %45 : vector<8x64xf32> to vector<1x8x64xf32>
    tpu.vector_store %arg6[%c0_17, %c0_18, %c0_19], %48 {strides = array<i32>} : memref<1x8x64xf32, #tpu.memory_space<vmem>>, vector<1x8x64xf32>,
    return
  }
  func.func @transform_0(%arg0: i32, %arg1: i32) -> (i32, i32) {
    %c0_i32 = arith.constant 0 : i32
    %c0_i32_0 = arith.constant 0 : i32
    %c0_i32_1 = arith.constant 0 : i32
    return %c0_i32, %c0_i32_0 : i32, i32
  }
  func.func @transform_1(%arg0: i32, %arg1: i32) -> (i32, i32) {
    %c0_i32 = arith.constant 0 : i32
    %c0_i32_0 = arith.constant 0 : i32
    %c0_i32_1 = arith.constant 0 : i32
    return %c0_i32, %c0_i32_0 : i32, i32
  }
  func.func @transform_2(%arg0: i32, %arg1: i32) -> (i32, i32, i32) {
    %c0_i32 = arith.constant 0 : i32
    %c0_i32_0 = arith.constant 0 : i32
    return %arg0, %c0_i32, %arg1 : i32, i32, i32
  }
  func.func @transform_3(%arg0: i32, %arg1: i32) -> (i32, i32, i32) {
    %c0_i32 = arith.constant 0 : i32
    %c0_i32_0 = arith.constant 0 : i32
    return %arg0, %c0_i32, %arg1 : i32, i32, i32
  }
  func.func @transform_4(%arg0: i32, %arg1: i32) -> (i32, i32, i32) {
    %c0_i32 = arith.constant 0 : i32
    %c0_i32_0 = arith.constant 0 : i32
    return %arg0, %c0_i32, %arg1 : i32, i32, i32
  }
}

</mosaic_0001>

<bundles_post_ra>
// kernel: tpu_custom_call.1
= control target key start
LH: loop header
LB: loop body
LE: loop exit
PB: predicated region body
PF: predicated region fallthrough
CT: control target
= control target key end

     0   :  { %9 = vsyncpa [#allocation3], 0  ;;  %s1132_s0 = inlined_call_operand.hbm [shape: bf16[8,8], index: 0, kind: input, shape index: {}]   ;;  %s1133_s1 = inlined_call_operand.vmem [shape: f32[8,1], index: 1, kind: input, shape index: {}]   ;;  %s1134_s2 = inlined_call_operand.vmem [shape: f32[2,8,64], index: 2, kind: input, shape index: {}]   ;;  %s1135_s3 = inlined_call_operand.hbm [shape: f32[2,8,64], index: 3, kind: input, shape index: {}]   ;;  %s1136_s4 = inlined_call_operand.hbm [shape: f32[2,8,64], index: 4, kind: output, shape index: {}]  }
   0x1   :  { %10 = vsyncpa [#allocation6], 0 }
   0x2   :  { %12 = vsyncpa [#allocation6 + $0x1], 0 }
   0x3   :  { %13 = vsyncpa [#allocation4], 0 }
   0x4   :  { %15 = vsyncpa [#allocation4 + $0x1], 0  ;;  %s885_s15 = smov 0   ;;  %s887_s16 = smov 0  }
   0x5   :  { %s889_s17 = smov 0   ;;  %s891_s18 = smov 0  }
   0x6   :  { %s893_s19 = smov 0   ;;  %s895_s20 = smov 0  }
   0x7 LB: > { %s572_s21 = sadd.s32 4294967295, %s852_s20   ;;  %s573_s22 = sadd.s32 4294967294, %s852_s20   ;;  %s852_s20 = sphi %s895_s20, %s21_s20   ;;  %s848_s19 = sphi %s893_s19, %s1161_s19   ;;  %s844_s18 = sphi %s891_s18, %s1160_s18   ;;  %s840_s17 = sphi %s889_s17, %s1159_s17   ;;  %s836_s16 = sphi %s887_s16, %s1158_s16   ;;  %s832_s15 = sphi %s885_s15, %s1157_s15  }
   0x8   : > { %p125_p0 = scmp.ne.s32.totalorder %s836_s16, %s832_s15  ;;  %p919_p1 = scmp.eq.s32.totalorder %s572_s21, 0 }
   0x9   : > { %p923_p2 = scmp.eq.s32.totalorder %s572_s21, 1  ;;  %p157_p3 = scmp.eq.s32.totalorder %s573_s22, 1 }
   0xa   : > { %s1141_s23 = scalar_select %p919_p1, 1, 0 }
   0xb   : > { %s1142_s24 = scalar_select %p923_p2, 1, 0 }
   0xc   : > { %p929_p4 = por %p919_p1, %p125_p0  ;;  %p574_p5 = scmp.ge.s32.totalorder %s852_s20, 1 }
   0xd   : > { %p934_p6 = por %p157_p3, %p125_p0  ;;  %p164_p7 = scmp.lt.s32.totalorder %s852_s20, 3 }
   0xe   : > { %s1143_s25 = scalar_select %p929_p4, 1, 0 }
   0xf   : > { %s1144_s26 = scalar_select %p934_p6, 1, 0 }
  0x10   : > { %p939_p8 = pnand %p574_p5, %p164_p7  ;;  %s854_s28 = smov [#allocation2]  }
  0x11   : > { %s177_s29 = sshll.u32 %s854_s28, 4  ;;  %s33_s5 = sadd.s32 1, %s848_s19  ;;  %s178_s29 = int_to_ptr.vmem [resolvable:$true] %s177_s29 }
  0x12   : > { %s1145_s27 = scalar_select %p939_p8, 1, 0 }
  0x13   : > { %p627_p10 = pneg %p939_p8  ;;  %s112_s6 = sadd.s32 1, %s840_s17 }
  0x14   : > { %p954_p12 = scmp.ge.s32.totalorder %s33_s5, 2  ;;  %s708_s10 = scalar_lea.hbm %s1132_s0, 64 }
  0x15   : > { %p948_p11 = pnand %p627_p10, %p919_p1  ;;  %p709_p13 = scmp.ne.s32.totalorder %s1132_s0, %s708_s10 }
  0x16   : > { %s1147_s7 = scalar_select %p954_p12, 1, 0 }
  0x17   : > { %p710_p0 = pneg %p948_p11  ;;  %p715_p7 = scmp.lt.u32.totalorder %s708_s10, %s1132_s0 }
  0x19   : > { %p711_p3 = pnand %p710_p0, %p709_p13 }
  0x1b   : > { %p712_p5 = pneg %p711_p3 }
  0x1d   : > { %p717_p10 = pnand %p715_p7, %p712_p5 }
  0x1f   : > { %720 = shalt.err (!%p717_p10)
}
  0x20   : > { %s721_s21 = scalar_lea.vmem %s178_s29, 64  ;;  %p729_p1 = scmp.lt.s32.totalorder %s178_s29, %s178_s29 }
  0x21   : > { %p722_p9 = scmp.ne.s32.totalorder %s178_s29, %s721_s21  ;;  %p730_p8 = scmp.lt.s32.totalorder %s721_s21, %s721_s21 }
  0x23   : > { %p724_p6 = pnand %p722_p9, %p710_p0  ;;  %p731_p2 = por %p730_p8, %p729_p1 }
  0x25   : > { %p725_p4 = pneg %p724_p6 }
  0x27   : > { %p732_p12 = pnand %p731_p2, %p725_p4 }
  0x29   : > { %735 = shalt.err (!%p732_p12)
}
  0x2a   : > { %630 = dma.hbm_to_vmem [thread:$0]  (!%p948_p11), %s1132_s0, 64, %s178_s29, [#allocation3]  }
  0x2b   : > { %p1148_p1 = scmp.ne.s32.totalorder %s1147_s7, 0  ;;  %p119_p2 = scmp.ne.s32.totalorder %s840_s17, %s836_s16 }
  0x2c   : > { %p120_p4 = scmp.eq.s32.totalorder %s852_s20, 0  ;;  %p640_p6 = scmp.lt.s32.totalorder %s852_s20, 2 }
  0x2d   : > { %s1163_s5 = smov (%p1148_p1, %s33_s5), 0  ;;  %p1149_p12 = scmp.ne.s32.totalorder %s1142_s24, 0 }
  0x2e   : > { %s107_s30 = ssub.s32 %s848_s19, %s1163_s5  ;;  %p121_p9 = por %p120_p4, %p119_p2 }
  0x2f   : > { %p110_p8 = scmp.eq.s32.totalorder %s107_s30, 0  ;;  %p986_p13 = por %p1149_p12, %p119_p2 }
  0x30   : > { %s201_s9 = sand.u32 1, %s840_s17   ;;  %s578_s7 = sshll.u32 %s848_s19, 7 }
  0x31   : > { %s994_s10 = scalar_select %p110_p8, %s840_s17, %s112_s6  }
  0x32   : > { %s577_s29 = sshll.u32 %s201_s9, 3  ;;  %s1000_s13 = scalar_lea.hbm %s1135_s3, %s578_s7 }
  0x33   : > { %s205_s24 = scalar_lea.vmem [#allocation5], %s577_s29  ;;  %p1004_p11 = pnand %p640_p6, %p121_p9 }
  0x34   : > { %s213_s14 = sshll.u32 %s205_s24, 4  ;;  %s202_s6 = scalar_lea.sflag [#allocation6], %s201_s9  ;;  %s1002_s14 = int_to_ptr.vmem [resolvable:$true] %s213_s14 }
  0x35   : > { %s736_s22 = scalar_lea.hbm %s1000_s13, 128  ;;  %p738_p3 = pneg %p1004_p11 }
  0x36   : > { %p737_p0 = scmp.ne.s32.totalorder %s1000_s13, %s736_s22  ;;  %s741_s29 = scalar_lea.hbm %s1135_s3, 256 }
  0x37   : > { %p742_p10 = scmp.lt.u32.totalorder %s1000_s13, %s1135_s3  ;;  %p743_p1 = scmp.lt.u32.totalorder %s741_s29, %s736_s22 }
  0x38   : > { %p739_p5 = pnand %p738_p3, %p737_p0  ;;  %p745_p4 = scmp.lt.u32.totalorder %s736_s22, %s1000_s13 }
  0x39   : > { %p744_p2 = por %p743_p1, %p742_p10 }
  0x3a   : > { %p740_p7 = pneg %p739_p5 }
  0x3b   : > { %p746_p6 = por %p745_p4, %p744_p2 }
  0x3d   : > { %p747_p8 = pnand %p746_p6, %p740_p7 }
  0x3f   : > { %750 = shalt.err (!%p747_p8)
}
  0x40   : > { %s751_s9 = scalar_lea.vmem %s1002_s14, 128  ;;  %s855_s12 = smov [#allocation5]  }
  0x41   : > { %p752_p9 = scmp.ne.s32.totalorder %s1002_s14, %s751_s9  ;;  %s756_s24 = sshll.u32 %s855_s12, 4  ;;  %s757_s24 = int_to_ptr.vmem [resolvable:$false] %s756_s24 }
  0x42   : > { %s758_s28 = scalar_lea.vmem %s757_s24, 256  ;;  %p759_p5 = scmp.lt.s32.totalorder %s1002_s14, %s757_s24 }
  0x43   : > { %p754_p12 = pnand %p752_p9, %p738_p3  ;;  %p760_p10 = scmp.lt.s32.totalorder %s758_s28, %s751_s9 }
  0x45   : > { %p755_p0 = pneg %p754_p12  ;;  %p761_p1 = por %p760_p10, %p759_p5 }
  0x47   : > { %p762_p2 = pnand %p761_p1, %p755_p0 }
  0x49   : > { %765 = shalt.err (!%p762_p2)
}
  0x4a   : > { %634 = dma.hbm_to_vmem [thread:$0]  (!%p1004_p11), %s1000_s13, 128, %s1002_s14, %s202_s6  }
  0x4b   : > { %p1152_p7 = scmp.ne.s32.totalorder %s1145_s27, 0 }
  0x4c   : > { %p1153_p3 = scmp.ne.s32.totalorder (!%p1152_p7), %s1141_s23, 0 }
  0x4d   : > { %222 = sbr.rel (%p1152_p7) target bundleno = 862 (0x35e), region = 36 }
  0x54   : > { %819 = dma.done.wait (%p1153_p3), [#allocation3], 64  }
  0x55   : > { %821 = vsyncadd (%p1153_p3), [#allocation3], 4294967232  ;;  %s1040_s22 = sand.u32 1, %s836_s16   ;;  %p1154_p11 = scmp.ne.s32.totalorder %s1143_s25, 0 }
  0x56   : > { %s581_s21 = sshll.u32 %s1040_s22, 3  ;;  %s229_s30 = scalar_lea.sflag [#allocation6], %s1040_s22 }
  0x57   : > { %s1046_s13 = scalar_lea.vmem [#allocation5], %s581_s21 }
  0x58   : > { %823 = dma.done.wait (%p1154_p11), %s229_s30, 128  }
  0x59   : > { %825 = vsyncadd (%p1154_p11), %s229_s30, 4294967168  ;;  %p264_p4 = scmp.lt.s32.totalorder %s844_s18, 1  ;;  %v856_v0 = vmov 0.0   ;;  %vm857_vm0 = vmmov 0   ;;  %v858_v1 = vmov 0   ;;  %vm280_vm1 = vcmask 1043456  }
  0x5a   : > { %601 = vmatprep.subr.bf16.mxu0 %v856_v0  ;;  %603 = vmatprep.mubr.msk.bf16.mxu0 %vm857_vm0, %v856_v0  ;;  %v273_v3 = vld [vmem:[%s1133_s1] sm:$0xff]  ;;  %vm276_vm2 = vcmask 64512   ;;  %s592_s11 = sshll.u32 %s844_s18, 7  ;;  %s263_s9 = scalar_lea.vmem [#allocation7], %s581_s21  ;;  %vm448_vm3 = vcmask 523264  }
  0x5b   : > { %s265_s23 = scalar_select %p264_p4, %s844_s18, 1  ;;  %695 = vset.pattern.permute.xlu0 %v858_v1  ;;  %607 = vmatprep.subr.bf16.mxu1 %v856_v0  ;;  %v272_v6 = vld [vmem:[#allocation2] sm:$0xf]  ;;  %v444_v44 = vld [vmem:[%s1046_s13] sm:$0xff] }
  0x5c   : > { %609 = vmatprep.mubr.msk.bf16.mxu1 %vm857_vm0, %v856_v0  ;;  %326 = vperm.xlu0 %695, %v273_v3   ;;  %s465_s12 = sshll.u32 %s263_s9, 4  ;;  %s1082_s30 = scalar_lea.hbm %s1136_s4, %s592_s11  ;;  %s1084_s12 = int_to_ptr.vmem [resolvable:$true] %s465_s12 }
  0x5d   : > { %s583_s25 = sshll.u32 %s265_s23, 3  ;;  %s451_s18 = scalar_lea.sflag [#allocation4], %s1040_s22 }
  0x5e   : > { %s270_s6 = scalar_lea.vmem %s1134_s2, %s583_s25  ;;  %s766_s13 = scalar_lea.vmem %s1084_s12, 128 }
  0x5f   : > { %v274_v2 = vld [vmem:[%s270_s6] sm:$0xff]  ;;  %p767_p6 = scmp.ne.s32.totalorder %s1084_s12, %s766_s13  ;;  %s859_s21 = smov [#allocation7]  }
  0x60   : > { %v275_v4 = vpack.c.bf16 %v274_v2, %v274_v2  ;;  %s770_s23 = sshll.u32 %s859_s21, 4  ;;  %s771_s23 = int_to_ptr.vmem [resolvable:$false] %s770_s23 }
  0x61   : > { %p768_p8 = pnand %p767_p6, %p986_p13  ;;  %s772_s25 = scalar_lea.vmem %s771_s23, 256 }
  0x62   : > { %v282_v5 = vsel %vm280_vm1, %v275_v4, 0  ;;  %p773_p12 = scmp.lt.s32.totalorder %s1084_s12, %s771_s23  ;;  %p774_p0 = scmp.lt.s32.totalorder %s772_s25, %s766_s13 }
  0x63   : > { %602 = vmatpush3.bf16.msra.mxu0 %v282_v5  ;;  %p769_p9 = pneg %p768_p8 }
  0x64   : > { %613 = vmatprep.subr.bf16.mxu0 %v856_v0  ;;  %p775_p5 = por %p774_p0, %p773_p12 }
  0x66   : > { %604 = vmatmul.mubr.msk.bf16.vlgmr.msra.gmra.mrb[0].mxu0 %vm276_vm2, %v272_v6  ;;  %p776_p10 = pnand %p775_p5, %p769_p9 }
  0x67   : > { %615 = vmatprep.mubr.msk.bf16.mxu0 %vm857_vm0, %v856_v0 }
  0xdb   : > { %v327_v7 = vpop.permute.xlu0 %326 }
 0x139   : > { %v318_v8 = vpop.f32.mrb[0].mxu0 }
 0x13a   : > { %v329_v9 = vadd.f32 %v327_v7, %v318_v8  ;;  %v605_v10 = vpop.f32.mrb[1].mxu0 }
 0x13b   : > { %v321_v11 = vpop.f32.mrb[2].mxu0 }
 0x13c   : > { %v585_v12 = vmul.f32 -1.442695, %v329_v9  ;;  %v606_v13 = vpop.f32.mrb[3].mxu0 }
 0x13e   : > { %696 = vpow2.f32 %v585_v12 }
 0x148   : > { %v697_v14 = vpop.eup %696 }
 0x149   : > { %v333_v15 = vadd.f32 1.0, %v697_v14 }
 0x14b   : > { %698 = vrcp.f32 %v333_v15 }
 0x155   : > { %v699_v16 = vpop.eup %698 }
 0x156   : > { %v336_v17 = vsub.f32 %v274_v2, %v699_v16 }
 0x158   : > { %v337_v18 = vpack.c.bf16 %v336_v17, %v336_v17 }
 0x15a   : > { %v339_v19 = vsel %vm280_vm1, %v337_v18, 0 }
 0x15b   : > { %608 = vmatpush3.bf16.msra.mxu1 %v339_v19 }
 0x15e   : > { %610 = vmatmul.mubr.msk.bf16.vlgmr.msra.gmra.mrb[0].mxu1 %vm276_vm2, %v272_v6 }
 0x231   : > { %v375_v20 = vpop.f32.mrb[0].mxu1 }
 0x232   : > { %v381_v21 = vadd.f32 %v375_v20, %v327_v7  ;;  %v611_v22 = vpop.f32.mrb[1].mxu1 }
 0x233   : > { %v378_v23 = vpop.f32.mrb[2].mxu1 }
 0x234   : > { %v382_v24 = vadd.f32 %v699_v16, %v381_v21  ;;  %v612_v25 = vpop.f32.mrb[3].mxu1 }
 0x236   : > { %v587_v26 = vmul.f32 -3.0, %v382_v24 }
 0x238   : > { %v385_v27 = vmul.f32 1.442695, %v587_v26 }
 0x23a   : > { %700 = vpow2.f32 %v385_v27 }
 0x244   : > { %v701_v28 = vpop.eup %700 }
 0x245   : > { %v387_v29 = vadd.f32 1.0, %v701_v28 }
 0x247   : > { %702 = vrcp.f32 %v387_v29 }
 0x251   : > { %v703_v30 = vpop.eup %702 }
 0x252   : > { %v390_v31 = vsub.f32 %v274_v2, %v703_v30 }
 0x254   : > { %v391_v32 = vpack.c.bf16 %v390_v31, %v390_v31 }
 0x256   : > { %v393_v33 = vsel %vm280_vm1, %v391_v32, 0 }
 0x257   : > { %614 = vmatpush3.bf16.msra.mxu0 %v393_v33 }
 0x25a   : > { %616 = vmatmul.mubr.msk.bf16.vlgmr.msra.gmra.mrb[4].mxu0 %vm276_vm2, %v272_v6 }
 0x32d   : > { %v429_v34 = vpop.f32.mrb[4].mxu0 }
 0x32e   : > { %v435_v35 = vadd.f32 %v429_v34, %v327_v7  ;;  %v617_v36 = vpop.f32.mrb[5].mxu0 }
 0x32f   : > { %v432_v37 = vpop.f32.mrb[6].mxu0 }
 0x330   : > { %v436_v38 = vadd.f32 %v703_v30, %v435_v35  ;;  %v618_v39 = vpop.f32.mrb[7].mxu0 }
 0x332   : > { %v589_v40 = vmul.f32 -12.0, %v436_v38 }
 0x334   : > { %v439_v41 = vmul.f32 1.442695, %v589_v40 }
 0x336   : > { %704 = vpow2.f32 %v439_v41 }
 0x340   : > { %v705_v42 = vpop.eup %704 }
 0x341   : > { %v441_v43 = vadd.f32 1.0, %v705_v42 }
 0x343   : > { %706 = vrcp.f32 %v441_v43 }
 0x34d   : > { %v707_v45 = vpop.eup %706 }
 0x34e   : > { %vm445_vm4 = vcmp.lt.f32.partialorder %v444_v44, %v707_v45 }
 0x34f   : > { %v590_v46 = vsel %vm445_vm4, 1.0, %v856_v0 }
 0x350   : > { %449 = vst.msk [vmem:[%s263_s9] sm:$0xff] %vm448_vm3, %v590_v46 }
 0x351   : > { %779 = shalt.err (!%p776_p10)
}
 0x352   : > { %s780_s22 = scalar_lea.hbm %s1082_s30, 128  ;;  %s784_s6 = scalar_lea.hbm %s1136_s4, 256 }
 0x353   : > { %p781_p1 = scmp.ne.s32.totalorder %s1082_s30, %s780_s22  ;;  %p785_p3 = scmp.lt.u32.totalorder %s1082_s30, %s1136_s4 }
 0x354   : > { %p786_p11 = scmp.lt.u32.totalorder %s784_s6, %s780_s22  ;;  %p788_p6 = scmp.lt.u32.totalorder %s780_s22, %s1082_s30 }
 0x355   : > { %p782_p2 = pnand %p781_p1, %p986_p13 }
 0x356   : > { %p787_p4 = por %p786_p11, %p785_p3 }
 0x357   : > { %p783_p7 = pneg %p782_p2 }
 0x358   : > { %p789_p8 = por %p788_p6, %p787_p4 }
 0x35a   : > { %p790_p9 = pnand %p789_p8, %p783_p7 }
 0x35c   : > { %793 = shalt.err (!%p790_p9)
}
 0x35d   : > { %625 = dma.vmem_to_hbm [thread:$0]  (%p986_p13), %s1084_s12, 128, %s1082_s30, %s451_s18  }
 0x35e PF: > { %s477_s11 = sand.u32 1, %s832_s15   ;;  %p1155_p12 = scmp.ne.s32.totalorder %s1144_s26, 0 }
 0x35f   : > { %p1156_p0 = scmp.ge.s32.totalorder %s852_s20, 2  ;;  %s478_s9 = scalar_lea.sflag [#allocation4], %s477_s11 }
 0x361   : > { %p636_p5 = pnand %p1156_p0, %p1155_p12 }
 0x363   : > { %827 = dma.done.wait (!%p636_p5), %s478_s9, 128  }
 0x364   : > { %829 = vsyncadd (!%p636_p5), %s478_s9, 4294967168  ;;  %s21_s20 = sadd.s32 1, %s852_s20   ;;  %s1157_s15 = smov %s836_s16 }
 0x365   : > { %p18_p10 = scmp.ge.s32.totalorder %s21_s20, 4   ;;  %s1158_s16 = smov %s840_s17 }
 0x366   : > { %s1159_s17 = smov %s994_s10  ;;  %s1160_s18 = smov %s848_s19 }
 0x367   : > { %s1161_s19 = smov %s1163_s5  ;;  %20 = sbr.rel (!%p18_p10) target bundleno = 7 (0x7), region = 89 }
 0x36e   :  { %483 = vsyncpa [#allocation3], 1 }
 0x36f   :  { %485 = vsyncpa [#allocation3 + $0x1], 1 }
 0x370   :  { %486 = vsyncpa [#allocation6], 1 }
 0x371   :  { %488 = vsyncpa [#allocation6 + $0x1], 1 }
 0x372   :  { %489 = vsyncpa [#allocation4], 1 }
 0x373   :  { %491 = vsyncpa [#allocation4 + $0x1], 1 }

</bundles_post_ra>
